<compile_context>
chip_gen: v6e
topology: v6e:2x2x1
jax: 0.10.0
libtpu: 0.0.40
codegen_flags: <defaults>
</compile_context>

<pallas_src>
import functools

import jax
import jax.numpy as jnp
from jax.experimental import pallas as pl
from jax.experimental.pallas import tpu as pltpu


def _round_up(a, m):
    return (a + m - 1) // m * m


def plugin_kernel(x_ref, w_down_ref, b_down_ref, w_up_ref, b_up_ref,
                  o_ref, acc_ref):
    """One (batch-tile i, hidden-tile k) grid step.

    x_ref:      [TB, D]   (same tile reused across all k)
    w_down_ref: [D, TK]
    b_down_ref: [1, TK]
    w_up_ref:   [TK, D]
    b_up_ref:   [1, D]
    o_ref:      [TB, D]
    acc_ref:    [TB, D] f32 scratch (residual accumulator over k)
    """
    k = pl.program_id(1)
    nk = pl.num_programs(1)

    @pl.when(k == 0)
    def _():
        acc_ref[...] = jnp.zeros_like(acc_ref)

    x = x_ref[...]  # keep native dtype (bf16/f32) for the MXU

    # downsampling_layer (this hidden slice) + activation -- exact per-k-tile
    h = jnp.dot(x, w_down_ref[...], preferred_element_type=jnp.float32)
    h = jnp.maximum(h + b_down_ref[...].astype(jnp.float32), 0.0)

    # upsampling_layer partial contribution, accumulated in f32
    acc_ref[...] += jnp.dot(h.astype(w_up_ref.dtype), w_up_ref[...],
                            preferred_element_type=jnp.float32)

    @pl.when(k == nk - 1)
    def _():
        r = acc_ref[...] + b_up_ref[...].astype(jnp.float32)
        y = jnp.maximum(x.astype(jnp.float32) + r, 0.0)
        o_ref[...] = y.astype(o_ref.dtype)


@functools.partial(
    jax.jit, static_argnames=("block_b", "block_k", "vmem_budget_bytes"))
def plugin_forward(x, w_down, b_down, w_up, b_up, *,
                   block_b=None, block_k=None,
                   vmem_budget_bytes=48 * 1024 * 1024):
    B, D = x.shape
    Dh = w_down.shape[1]
    assert w_down.shape == (D, Dh), w_down.shape
    assert w_up.shape == (Dh, D), w_up.shape
    b_down = b_down.reshape(1, Dh)
    b_up = b_up.reshape(1, D)

    # ---- choose tiling (lane-dense, sublane-aligned) ------------------------
    D_p = _round_up(D, 128)                      # lane axis of x / out / W_up
    Dh_128 = _round_up(Dh, 128)                  # lane axis of W_down / b_down
    if block_k is None:
        if Dh_128 <= 512:
            block_k = Dh_128
        elif Dh_128 % 512 == 0:
            block_k = 512
        elif Dh_128 % 256 == 0:
            block_k = 256
        else:
            block_k = 128
    Dh_p = _round_up(Dh_128, block_k)

    sub = max(8, 32 // x.dtype.itemsize)         # 8 for f32, 16 for bf16
    if block_b is None:
        block_b = min(256, _round_up(B, sub))
    block_b = _round_up(block_b, sub)

    def vmem_estimate(tb):
        itm = x.dtype.itemsize
        wit = w_down.dtype.itemsize
        est = 2 * tb * D_p * itm                             # x tile (x2 bufs)
        est += 2 * tb * D_p * itm                            # out tile
        est += 2 * (D_p * block_k + block_k * D_p) * wit     # weight tiles
        est += 2 * (block_k + D_p) * wit                     # biases
        est += tb * D_p * 4                                  # f32 accumulator
        return est

    # shrink the batch tile if the estimate blows the VMEM budget
    while block_b > sub and vmem_estimate(block_b) > vmem_budget_bytes:
        block_b = _round_up(block_b // 2, sub)

    B_p = _round_up(B, block_b)

    # ---- zero-pad operands (exact: padded lanes stay 0 through ReLU) --------
    def pad2(a, r, c):
        return jnp.pad(a, ((0, r - a.shape[0]), (0, c - a.shape[1])))

    x_p = pad2(x, B_p, D_p)
    w_down_p = pad2(w_down, D_p, Dh_p)
    b_down_p = pad2(b_down, 1, Dh_p)
    w_up_p = pad2(w_up, Dh_p, D_p)
    b_up_p = pad2(b_up, 1, D_p)

    grid = (B_p // block_b, Dh_p // block_k)
    vmem_limit = int(min(64 * 1024 * 1024,
                         max(32 * 1024 * 1024,
                             vmem_estimate(block_b) + 8 * 1024 * 1024)))

    out_p = pl.pallas_call(
        plugin_kernel,
        out_shape=jax.ShapeDtypeStruct((B_p, D_p), x.dtype),
        grid_spec=pltpu.PrefetchScalarGridSpec(
            num_scalar_prefetch=0,
            grid=grid,
            in_specs=[
                pl.BlockSpec((block_b, D_p), lambda i, k: (i, 0)),   # x tile
                pl.BlockSpec((D_p, block_k), lambda i, k: (0, k)),   # W_down[:, k]
                pl.BlockSpec((1, block_k), lambda i, k: (0, k)),     # b_down[k]
                pl.BlockSpec((block_k, D_p), lambda i, k: (k, 0)),   # W_up[k, :]
                pl.BlockSpec((1, D_p), lambda i, k: (0, 0)),         # b_up
            ],
            out_specs=pl.BlockSpec((block_b, D_p), lambda i, k: (i, 0)),
            scratch_shapes=[pltpu.VMEM((block_b, D_p), jnp.float32)],
        ),
        compiler_params=pltpu.CompilerParams(
            dimension_semantics=("parallel", "arbitrary"),
            vmem_limit_bytes=vmem_limit,
        ),
    )(x_p, w_down_p, b_down_p, w_up_p, b_up_p)

    return out_p[:B, :D]


def init_plugin_params(key, dimension, dtype=jnp.float32):
    """Deterministic synthetic init (stand-in for default_lite_plugin_init)."""
    # TODO(synk): exact default_lite_plugin_init not reproduced (external code).
    dh = dimension // 2
    k1, k2 = jax.random.split(key, 2)
    w_down = jax.random.normal(k1, (dimension, dh), dtype) * 0.02
    b_down = jnp.zeros((1, dh), dtype)
    w_up = jax.random.normal(k2, (dh, dimension), dtype) * 0.02
    b_up = jnp.zeros((1, dimension), dtype)
    return w_down, b_down, w_up, b_up


def plugin_reference(x, w_down, b_down, w_up, b_up):
    h = jnp.maximum(x @ w_down + b_down, 0.0)
    r = h @ w_up + b_up
    return jnp.maximum(x + r, 0.0)


if __name__ == "__main__":
    key = jax.random.PRNGKey(0)
    batch, dimension = 8, 32

    kx, kp = jax.random.split(key)
    x = jax.random.normal(kx, (batch, dimension), jnp.float32)
    w_down, b_down, w_up, b_up = init_plugin_params(kp, dimension)

    out = plugin_forward(x, w_down, b_down, w_up, b_up)
    out = jax.block_until_ready(out)

    ref = plugin_reference(x, w_down, b_down, w_up, b_up)
    assert out.shape == (batch, dimension)
    assert jnp.allclose(out, ref, atol=1e-4, rtol=1e-4), "mismatch vs reference"

    print("KERNEL_OK")
</pallas_src>

<mosaic_0001>
module attributes {stable_mosaic.version = 11 : i64} {
  func.func @plugin_kernel(%arg0: i32, %arg1: i32, %arg2: memref<8x128xf32, #tpu.memory_space<vmem>>, %arg3: memref<128x128xf32, #tpu.memory_space<vmem>>, %arg4: memref<1x128xf32, #tpu.memory_space<vmem>>, %arg5: memref<128x128xf32, #tpu.memory_space<vmem>>, %arg6: memref<1x128xf32, #tpu.memory_space<vmem>>, %arg7: memref<8x128xf32, #tpu.memory_space<vmem>>, %arg8: memref<8x128xf32, #tpu.memory_space<vmem>>) attributes {dimension_semantics = [#tpu.dimension_semantics<parallel>, #tpu.dimension_semantics<arbitrary>], iteration_bounds = array<i64: 1, 1>, scalar_prefetch = 0 : i64, scratch_operands = 1 : i64, tpu.core_type = #tpu.core_type<tc>, window_params = [{transform_indices = @transform_0, window_bounds = array<i64: 8, 128>}, {transform_indices = @transform_1, window_bounds = array<i64: 128, 128>}, {transform_indices = @transform_2, window_bounds = array<i64: 1, 128>}, {transform_indices = @transform_3, window_bounds = array<i64: 128, 128>}, {pipeline_mode = #tpu.pipeline_mode<synchronous>, transform_indices = @transform_4, window_bounds = array<i64: 1, 128>}, {transform_indices = @transform_5, window_bounds = array<i64: 8, 128>}]} {
    %c0_i32 = arith.constant 0 : i32
    %0 = arith.cmpi eq, %arg1, %c0_i32 : i32
    %1 = arith.extui %0 : i1 to i32
    %c0_i32_0 = arith.constant 0 : i32
    %2 = arith.cmpi ne, %1, %c0_i32_0 : i32
    scf.if %2 {
      %cst_16 = arith.constant 0.000000e+00 : f32
      %19 = vector.broadcast %cst_16 : f32 to vector<8x128xf32>
      %c0_17 = arith.constant 0 : index
      %c0_18 = arith.constant 0 : index
      %20 = vector.load %arg8[%c0_17, %c0_18] : memref<8x128xf32, #tpu.memory_space<vmem>>, vector<8x128xf32>
      tpu.vector_store %arg8[%c0_17, %c0_18], %19 {strides = array<i32>} : memref<8x128xf32, #tpu.memory_space<vmem>>, vector<8x128xf32>,
    } else {
    }
    %c0 = arith.constant 0 : index
    %c0_1 = arith.constant 0 : index
    %3 = vector.load %arg2[%c0, %c0_1] : memref<8x128xf32, #tpu.memory_space<vmem>>, vector<8x128xf32>
    %c0_2 = arith.constant 0 : index
    %c0_3 = arith.constant 0 : index
    %4 = vector.load %arg3[%c0_2, %c0_3] : memref<128x128xf32, #tpu.memory_space<vmem>>, vector<128x128xf32>
    %cst = arith.constant dense<0.000000e+00> : vector<8x128xf32>
    %5 = tpu.matmul %3, %4, %cst {dimension_numbers = #tpu.dot_dimension_numbers<[1], [0], [0], [1], [0, 0, 1, 1], [], []>} : vector<8x128xf32>, vector<128x128xf32>, vector<8x128xf32> -> vector<8x128xf32>
    %c0_4 = arith.constant 0 : index
    %c0_5 = arith.constant 0 : index
    %6 = vector.load %arg4[%c0_4, %c0_5] : memref<1x128xf32, #tpu.memory_space<vmem>>, vector<1x128xf32>
    %7 = vector.broadcast %6 : vector<1x128xf32> to vector<8x128xf32>
    %8 = arith.addf %5, %7 : vector<8x128xf32>
    %cst_6 = arith.constant 0.000000e+00 : f32
    %9 = vector.broadcast %cst_6 : f32 to vector<8x128xf32>
    %10 = arith.maximumf %8, %9 : vector<8x128xf32>
    %c0_7 = arith.constant 0 : index
    %c0_8 = arith.constant 0 : index
    %11 = vector.load %arg8[%c0_7, %c0_8] : memref<8x128xf32, #tpu.memory_space<vmem>>, vector<8x128xf32>
    %c0_9 = arith.constant 0 : index
    %c0_10 = arith.constant 0 : index
    %12 = vector.load %arg5[%c0_9, %c0_10] : memref<128x128xf32, #tpu.memory_space<vmem>>, vector<128x128xf32>
    %cst_11 = arith.constant dense<0.000000e+00> : vector<8x128xf32>
    %13 = tpu.matmul %10, %12, %cst_11 {dimension_numbers = #tpu.dot_dimension_numbers<[1], [0], [0], [1], [0, 0, 1, 1], [], []>} : vector<8x128xf32>, vector<128x128xf32>, vector<8x128xf32> -> vector<8x128xf32>
    %14 = arith.addf %11, %13 : vector<8x128xf32>
    %c0_12 = arith.constant 0 : index
    %c0_13 = arith.constant 0 : index
    %15 = vector.load %arg8[%c0_12, %c0_13] : memref<8x128xf32, #tpu.memory_space<vmem>>, vector<8x128xf32>
    tpu.vector_store %arg8[%c0_12, %c0_13], %14 {strides = array<i32>} : memref<8x128xf32, #tpu.memory_space<vmem>>, vector<8x128xf32>,
    %c0_i32_14 = arith.constant 0 : i32
    %16 = arith.cmpi eq, %arg1, %c0_i32_14 : i32
    %17 = arith.extui %16 : i1 to i32
    %c0_i32_15 = arith.constant 0 : i32
    %18 = arith.cmpi ne, %17, %c0_i32_15 : i32
    scf.if %18 {
      %c0_16 = arith.constant 0 : index
      %c0_17 = arith.constant 0 : index
      %19 = vector.load %arg8[%c0_16, %c0_17] : memref<8x128xf32, #tpu.memory_space<vmem>>, vector<8x128xf32>
      %c0_18 = arith.constant 0 : index
      %c0_19 = arith.constant 0 : index
      %20 = vector.load %arg6[%c0_18, %c0_19] : memref<1x128xf32, #tpu.memory_space<vmem>>, vector<1x128xf32>
      %21 = vector.broadcast %20 : vector<1x128xf32> to vector<8x128xf32>
      %22 = arith.addf %19, %21 : vector<8x128xf32>
      %23 = arith.addf %3, %22 : vector<8x128xf32>
      %cst_20 = arith.constant 0.000000e+00 : f32
      %24 = vector.broadcast %cst_20 : f32 to vector<8x128xf32>
      %25 = arith.maximumf %23, %24 : vector<8x128xf32>
      %c0_21 = arith.constant 0 : index
      %c0_22 = arith.constant 0 : index
      %26 = vector.load %arg7[%c0_21, %c0_22] : memref<8x128xf32, #tpu.memory_space<vmem>>, vector<8x128xf32>
      tpu.vector_store %arg7[%c0_21, %c0_22], %25 {strides = array<i32>} : memref<8x128xf32, #tpu.memory_space<vmem>>, vector<8x128xf32>,
    } else {
    }
    return
  }
  func.func @transform_0(%arg0: i32, %arg1: i32) -> (i32, i32) {
    %c0_i32 = arith.constant 0 : i32
    %c0_i32_0 = arith.constant 0 : i32
    return %arg0, %c0_i32 : i32, i32
  }
  func.func @transform_1(%arg0: i32, %arg1: i32) -> (i32, i32) {
    %c0_i32 = arith.constant 0 : i32
    %c0_i32_0 = arith.constant 0 : i32
    return %c0_i32, %arg1 : i32, i32
  }
  func.func @transform_2(%arg0: i32, %arg1: i32) -> (i32, i32) {
    %c0_i32 = arith.constant 0 : i32
    %c0_i32_0 = arith.constant 0 : i32
    return %c0_i32, %arg1 : i32, i32
  }
  func.func @transform_3(%arg0: i32, %arg1: i32) -> (i32, i32) {
    %c0_i32 = arith.constant 0 : i32
    %c0_i32_0 = arith.constant 0 : i32
    return %arg1, %c0_i32 : i32, i32
  }
  func.func @transform_4(%arg0: i32, %arg1: i32) -> (i32, i32) {
    %c0_i32 = arith.constant 0 : i32
    %c0_i32_0 = arith.constant 0 : i32
    %c0_i32_1 = arith.constant 0 : i32
    return %c0_i32, %c0_i32_0 : i32, i32
  }
  func.func @transform_5(%arg0: i32, %arg1: i32) -> (i32, i32) {
    %c0_i32 = arith.constant 0 : i32
    %c0_i32_0 = arith.constant 0 : i32
    return %arg0, %c0_i32 : i32, i32
  }
}

</mosaic_0001>

<bundles_post_ra>
// kernel: plugin_forward.1
= control target key start
LH: loop header
LB: loop body
LE: loop exit
PB: predicated region body
PF: predicated region fallthrough
CT: control target
= control target key end

     0   :  { %v370_v1 = vmov 0.0   ;;  %vm371_vm0 = vmmov 0   ;;  %s545_s0 = inlined_call_operand.vmem [shape: f32[8,128], index: 0, kind: input, shape index: {}]   ;;  %s546_s1 = inlined_call_operand.vmem [shape: f32[128,128], index: 1, kind: input, shape index: {}]   ;;  %s547_s2 = inlined_call_operand.vmem [shape: f32[1,128], index: 2, kind: input, shape index: {}]   ;;  %s548_s3 = inlined_call_operand.vmem [shape: f32[128,128], index: 3, kind: input, shape index: {}]   ;;  %s549_s4 = inlined_call_operand.vmem [shape: f32[1,128], index: 4, kind: input, shape index: {}]   ;;  %s550_s5 = inlined_call_operand.hbm [shape: f32[8,128], index: 5, kind: output, shape index: {}]  }
   0x1   :  { %v42_v0 = vld [vmem:[%s546_s1 + $0x78] sm:$0xff]  ;;  %275 = vmatprep.subr.mxu0 %v370_v1  ;;  %v41_v2 = vld [vmem:[%s546_s1 + $0x70] sm:$0xff]  ;;  %307 = vmatprep.mubr.msk.f32.mxu0 %vm371_vm0, %v370_v1  ;;  %v40_v3 = vld [vmem:[%s546_s1 + $0x68] sm:$0xff] }
   0x2   :  { %276 = vmatpush3.msra.mxu0 %v42_v0  ;;  %310 = vmatprep.subr.mxu1 %v370_v1  ;;  %v39_v4 = vld [vmem:[%s546_s1 + $0x60] sm:$0xff]  ;;  %v137_v5 = vld [vmem:[%s548_s3 + $0x78] sm:$0xff]  ;;  %v136_v6 = vld [vmem:[%s548_s3 + $0x70] sm:$0xff] }
   0x3   :  { %277 = vmatprep.subr.mxu0 %v370_v1  ;;  %342 = vmatprep.mubr.msk.f32.mxu1 %vm371_vm0, %v370_v1  ;;  %v38_v7 = vld [vmem:[%s546_s1 + $0x58] sm:$0xff]  ;;  %v135_v8 = vld [vmem:[%s548_s3 + $0x68] sm:$0xff]  ;;  %v37_v9 = vld [vmem:[%s546_s1 + $0x50] sm:$0xff] }
   0x4   :  { %278 = vmatpush3.msra.mxu0 %v41_v2  ;;  %311 = vmatpush3.msra.mxu1 %v137_v5  ;;  %v134_v10 = vld [vmem:[%s548_s3 + $0x60] sm:$0xff] }
   0x5   :  { %279 = vmatprep.subr.mxu0 %v370_v1  ;;  %312 = vmatprep.subr.mxu1 %v370_v1 }
   0x6   :  { %280 = vmatpush3.msra.mxu0 %v40_v3  ;;  %313 = vmatpush3.msra.mxu1 %v136_v6 }
   0x7   :  { %281 = vmatprep.subr.mxu0 %v370_v1  ;;  %314 = vmatprep.subr.mxu1 %v370_v1 }
   0x8   :  { %282 = vmatpush3.msra.mxu0 %v39_v4  ;;  %315 = vmatpush3.msra.mxu1 %v135_v8 }
   0x9   :  { %283 = vmatprep.subr.mxu0 %v370_v1 }
   0xa   :  { %284 = vmatpush3.msra.mxu0 %v38_v7 }
   0xb   :  { %10 = vsyncpa [#allocation4], 0  ;;  %285 = vmatprep.subr.mxu0 %v370_v1  ;;  %v36_v11 = vld [vmem:[%s546_s1 + $0x48] sm:$0xff]  ;;  %316 = vmatprep.subr.mxu1 %v370_v1  ;;  %v133_v12 = vld [vmem:[%s548_s3 + $0x58] sm:$0xff]  ;;  %s372_s11 = smov [#allocation3]  }
   0xc   :  { %286 = vmatpush3.msra.mxu0 %v37_v9  ;;  %317 = vmatpush3.msra.mxu1 %v134_v10  ;;  %v35_v13 = vld [vmem:[%s546_s1 + $0x40] sm:$0xff]  ;;  %v132_v14 = vld [vmem:[%s548_s3 + $0x50] sm:$0xff]  ;;  %v34_v15 = vld [vmem:[%s546_s1 + $0x38] sm:$0xff]  ;;  %s231_s12 = sshll.u32 %s372_s11, 4  ;;  %s232_s12 = int_to_ptr.vmem [resolvable:$true] %s231_s12 }
   0xd   :  { %287 = vmatprep.subr.mxu0 %v370_v1  ;;  %318 = vmatprep.subr.mxu1 %v370_v1  ;;  %v131_v16 = vld [vmem:[%s548_s3 + $0x48] sm:$0xff]  ;;  %v33_v17 = vld [vmem:[%s546_s1 + $0x30] sm:$0xff]  ;;  %v130_v18 = vld [vmem:[%s548_s3 + $0x40] sm:$0xff]  ;;  %p353_p1 = scmp.lt.s32.totalorder %s232_s12, %s232_s12 }
   0xe   :  { %288 = vmatpush3.msra.mxu0 %v36_v11  ;;  %319 = vmatpush3.msra.mxu1 %v133_v12  ;;  %v32_v19 = vld [vmem:[%s546_s1 + $0x28] sm:$0xff]  ;;  %v129_v20 = vld [vmem:[%s548_s3 + $0x38] sm:$0xff]  ;;  %v31_v21 = vld [vmem:[%s546_s1 + $0x20] sm:$0xff] }
   0xf   :  { %289 = vmatprep.subr.mxu0 %v370_v1  ;;  %320 = vmatprep.subr.mxu1 %v370_v1  ;;  %v128_v22 = vld [vmem:[%s548_s3 + $0x30] sm:$0xff]  ;;  %v30_v23 = vld [vmem:[%s546_s1 + $0x18] sm:$0xff]  ;;  %v127_v24 = vld [vmem:[%s548_s3 + $0x28] sm:$0xff] }
  0x10   :  { %290 = vmatpush3.msra.mxu0 %v35_v13  ;;  %321 = vmatpush3.msra.mxu1 %v132_v14  ;;  %v29_v25 = vld [vmem:[%s546_s1 + $0x10] sm:$0xff]  ;;  %v126_v26 = vld [vmem:[%s548_s3 + $0x20] sm:$0xff]  ;;  %v28_v27 = vld [vmem:[%s546_s1 + $0x8] sm:$0xff] }
  0x11   :  { %291 = vmatprep.subr.mxu0 %v370_v1  ;;  %322 = vmatprep.subr.mxu1 %v370_v1  ;;  %v125_v28 = vld [vmem:[%s548_s3 + $0x18] sm:$0xff]  ;;  %v27_v29 = vld [vmem:[%s546_s1] sm:$0xff]  ;;  %v124_v31 = vld [vmem:[%s548_s3 + $0x10] sm:$0xff] }
  0x12   :  { %292 = vmatpush3.msra.mxu0 %v34_v15  ;;  %323 = vmatpush3.msra.mxu1 %v131_v16  ;;  %v26_v30 = vld [vmem:[%s545_s0] sm:$0xff]  ;;  %v123_v32 = vld [vmem:[%s548_s3 + $0x8] sm:$0xff] }
  0x13   :  { %293 = vmatprep.subr.mxu0 %v370_v1  ;;  %324 = vmatprep.subr.mxu1 %v370_v1  ;;  %v122_v33 = vld [vmem:[%s548_s3] sm:$0xff]  ;;  %s348_s3 = scalar_lea.vmem %s232_s12, 128 }
  0x14   :  { %294 = vmatpush3.msra.mxu0 %v33_v17  ;;  %325 = vmatpush3.msra.mxu1 %v130_v18  ;;  %v239_v34 = vld [vmem:[%s547_s2] ss:$0 sm:$0xff]  ;;  %p349_p0 = scmp.ne.s32.totalorder %s232_s12, %s348_s3  ;;  %p354_p2 = scmp.lt.s32.totalorder %s348_s3, %s348_s3 }
  0x15   :  { %295 = vmatprep.subr.mxu0 %v370_v1  ;;  %326 = vmatprep.subr.mxu1 %v370_v1  ;;  %v240_v39 = vld [vmem:[%s549_s4] ss:$0 sm:$0xff] }
  0x16   :  { %296 = vmatpush3.msra.mxu0 %v32_v19  ;;  %327 = vmatpush3.msra.mxu1 %v129_v20  ;;  %p355_p3 = por %p354_p2, %p353_p1 }
  0x17   :  { %297 = vmatprep.subr.mxu0 %v370_v1  ;;  %328 = vmatprep.subr.mxu1 %v370_v1 }
  0x18   :  { %298 = vmatpush3.msra.mxu0 %v31_v21  ;;  %329 = vmatpush3.msra.mxu1 %v128_v22  ;;  %p356_p4 = pnand %p355_p3, %p349_p0 }
  0x19   :  { %299 = vmatprep.subr.mxu0 %v370_v1  ;;  %330 = vmatprep.subr.mxu1 %v370_v1 }
  0x1a   :  { %300 = vmatpush3.msra.mxu0 %v30_v23  ;;  %331 = vmatpush3.msra.mxu1 %v127_v24 }
  0x1b   :  { %301 = vmatprep.subr.mxu0 %v370_v1  ;;  %332 = vmatprep.subr.mxu1 %v370_v1 }
  0x1c   :  { %302 = vmatpush3.msra.mxu0 %v29_v25  ;;  %333 = vmatpush3.msra.mxu1 %v126_v26 }
  0x1d   :  { %303 = vmatprep.subr.mxu0 %v370_v1  ;;  %334 = vmatprep.subr.mxu1 %v370_v1 }
  0x1e   :  { %304 = vmatpush3.msra.mxu0 %v28_v27  ;;  %335 = vmatpush3.msra.mxu1 %v125_v28 }
  0x1f   :  { %305 = vmatprep.subr.mxu0 %v370_v1  ;;  %336 = vmatprep.subr.mxu1 %v370_v1 }
  0x20   :  { %306 = vmatpush3.msra.mxu0 %v27_v29  ;;  %337 = vmatpush3.msra.mxu1 %v124_v31 }
  0x21   :  { %308 = vmatmul.mubr.f32.vlgmr.msra.gmra.mxu0 %v26_v30  ;;  %338 = vmatprep.subr.mxu1 %v370_v1 }
  0x22   :  { %339 = vmatpush3.msra.mxu1 %v123_v32 }
  0x23   :  { %340 = vmatprep.subr.mxu1 %v370_v1 }
  0x24   :  { %341 = vmatpush3.msra.mxu1 %v122_v33 }
  0xe1   :  { %v116_v35 = vpop.f32.mrf.mxu0 }
  0xe2   :  { %v117_v36 = vadd.f32 %v239_v34, %v116_v35 }
  0xe3   :  { %v309_v37 = vpop.f32.mrf.mxu0 }
  0xe4   :  { %v120_v38 = vmax.f32 %v117_v36, 0.0 }
  0xe6   :  { %343 = vmatmul.mubr.f32.vlgmr.msra.gmra.mxu1 %v120_v38 }
 0x1a6   :  { %v204_v40 = vpop.f32.mrf.mxu1 }
 0x1a7   :  { %v221_v41 = vadd.f32 %v240_v39, %v204_v40 }
 0x1a8   :  { %v344_v42 = vpop.f32.mrf.mxu1 }
 0x1a9   :  { %v222_v43 = vadd.f32 %v221_v41, %v26_v30 }
 0x1ab   :  { %v223_v44 = vmax.f32 %v222_v43, 0.0 }
 0x1ad   :  { %224 = vst [vmem:[#allocation3] sm:$0xff] %v223_v44 }
 0x1ae   :  { %359 = shalt.err (!%p356_p4)
}
 0x1af   :  { %234 = dma.vmem_to_hbm [thread:$0]  %s232_s12, 128, %s550_s5, [#allocation4]  }
 0x1b0   :  { %368 = dma.done.wait [#allocation4], 128  }
 0x1b1   :  { %369 = vsyncadd [#allocation4], 4294967168 }
 0x1b2   :  { %238 = vsyncpa [#allocation4], 1 }

</bundles_post_ra>
